<compile_context>
chip_gen: v6e
topology: v6e:2x2x1
jax: 0.10.0
libtpu: 0.0.40
codegen_flags: <defaults>
</compile_context>

<pallas_src>
import functools

import jax
import jax.numpy as jnp
import numpy as np
from jax.experimental import pallas as pl
from jax.experimental.pallas import tpu as pltpu


def _tap_offsets_and_masks(H, W):
    """Static flat-index offsets and 0/1 validity masks for the 9 conv taps."""
    HW = H * W
    hh, ww = np.meshgrid(np.arange(H), np.arange(W), indexing="ij")
    offsets, masks = [], np.zeros((9, HW), np.float32)
    t = 0
    for dy in (-1, 0, 1):
        for dx in (-1, 0, 1):
            offsets.append(dy * W + dx)
            valid = ((hh + dy >= 0) & (hh + dy < H) &
                     (ww + dx >= 0) & (ww + dx < W))
            masks[t] = valid.reshape(HW).astype(np.float32)
            t += 1
    return tuple(offsets), masks


def _pick_batches_per_block(N, C_in, requested):
    """How many batch images to pack into one block (fill the 8 f32 sublanes)."""
    nb = int(requested) if requested is not None else max(1, 8 // max(1, C_in))
    nb = max(1, min(nb, N))
    while N % nb != 0:          # keep the grid exact (no ragged last block)
        nb -= 1
    return nb


def _vmem_limit_bytes(nb, c_in, c_out, hw, itemsize):
    """Derive the VMEM budget from actual block sizes instead of a hard 32 MiB."""
    ru = lambda v, m: -(-v // m) * m
    x_blk = nb * c_in * hw * itemsize
    o_blk = nb * c_out * hw * itemsize
    w_tot = (ru(9, 8) * ru(hw, 128)                     # border masks
             + ru(nb * c_in, 8) * 128                   # per-tap channel weights
             + ru(nb * c_out, 8) * ru(nb * c_in, 128)   # packed 1x1 weight
             + ru(nb * c_out, 8) * 128) * 4             # fused bias
    # x/out (and, conservatively, the grid-invariant weights) double-buffered,
    # plus headroom for compiler-internal scratch.
    return int(max(2 * (x_blk + o_blk + w_tot) + (2 << 20), 4 << 20))


@functools.partial(jax.jit, static_argnames=("batches_per_block",))
def depthwise_conv_pallas(x_nchw, dw_w, dw_b, pw_w, pw_b, *, batches_per_block=None):
    """Forward of DepthWiseConv (torch weight layouts), NCHW in / NCHW out.

    x_nchw: (N, C_in, H, W)
    dw_w  : (C_in, 1, 3, 3)     depthwise conv weight
    dw_b  : (C_in,)
    pw_w  : (C_out, C_in, 1, 1) pointwise conv weight
    pw_b  : (C_out,)
    """
    N, C_in, H, W = x_nchw.shape
    C_out = pw_w.shape[0]
    HW = H * W

    nb = _pick_batches_per_block(N, C_in, batches_per_block)
    n_grp = N // nb
    nbc_in, nbc_out = nb * C_in, nb * C_out

    offsets, masks_np = _tap_offsets_and_masks(H, W)
    masks = jnp.asarray(masks_np)                                      # (9, HW)

    # Tiny (weight-sized) preprocessing -- negligible vs. the activation tensor.
    dwk = dw_w[:, 0, :, :].reshape(C_in, 9).astype(jnp.float32)        # (C_in, 9)
    dwk_packed = jnp.tile(dwk, (nb, 1))                                # (nb*C_in, 9)
    pww = pw_w[:, :, 0, 0].astype(jnp.float32)                         # (C_out, C_in)
    # Block-diagonal packed 1x1 weight: one MXU dot handles all packed batches.
    pww_packed = jnp.kron(jnp.eye(nb, dtype=jnp.float32), pww)         # (nb*C_out, nb*C_in)
    # Fold the depthwise bias through the 1x1 conv into one fused bias.
    pwb_fused = pw_b.astype(jnp.float32) + pww @ dw_b.astype(jnp.float32)
    pwb_packed = jnp.tile(pwb_fused, (nb,)).reshape(nbc_out, 1)        # (nb*C_out, 1)

    # Layout-preserving (zero-copy) reshape: nb batches stacked along sublanes,
    # lane dim is H*W (a dense multiple of 128 at the test shape).
    x_blocks = x_nchw.reshape(n_grp, nbc_in, HW)

    def kernel(x_ref, mask_ref, dwk_ref, pww_ref, pwb_ref, o_ref):
        x = x_ref[0].astype(jnp.float32)                     # (nb*C_in, HW), lane-dense
        # Depthwise 3x3: 9 static lane rotations (XLU) with border mask (spatial)
        # and per-channel tap weight (sublane) applied on the VPU.
        y = jnp.zeros((nbc_in, HW), jnp.float32)
        for t, off in enumerate(offsets):
            tap = x if off == 0 else pltpu.roll(x, shift=(-off) % HW, axis=1)
            m_t = mask_ref[pl.ds(t, 1), :]                   # (1, HW)      border mask
            w_t = dwk_ref[:, pl.ds(t, 1)]                    # (nb*C_in, 1) tap weight
            y = y + (tap * m_t) * w_t
        # Pointwise 1x1 on the otherwise-idle MXU: block-diagonal packed weight
        # handles all packed batches in a single dot; fused bias added once.
        acc = jnp.dot(pww_ref[...], y, preferred_element_type=jnp.float32)
        acc = acc + pwb_ref[...]
        o_ref[0] = acc.astype(o_ref.dtype)                   # unmasked lane-dense stores

    out_blocks = pl.pallas_call(
        kernel,
        out_shape=jax.ShapeDtypeStruct((n_grp, nbc_out, HW), x_nchw.dtype),
        grid_spec=pltpu.PrefetchScalarGridSpec(
            num_scalar_prefetch=0,
            grid=(n_grp,),
            in_specs=[
                pl.BlockSpec((1, nbc_in, HW), lambda g: (g, 0, 0)),
                pl.BlockSpec((9, HW), lambda g: (0, 0)),
                pl.BlockSpec((nbc_in, 9), lambda g: (0, 0)),
                pl.BlockSpec((nbc_out, nbc_in), lambda g: (0, 0)),
                pl.BlockSpec((nbc_out, 1), lambda g: (0, 0)),
            ],
            out_specs=pl.BlockSpec((1, nbc_out, HW), lambda g: (g, 0, 0)),
        ),
        compiler_params=pltpu.CompilerParams(
            # Batch-group axis stays "parallel" so v7x's 2 TCs split it when
            # n_grp > 1; on 1-TC parts it is just a (short) serial loop.
            dimension_semantics=("parallel",),
            vmem_limit_bytes=_vmem_limit_bytes(nb, C_in, C_out, HW,
                                               x_nchw.dtype.itemsize),
        ),
    )(x_blocks, masks, dwk_packed, pww_packed, pwb_packed)

    # Layout-preserving reshape back to NCHW.
    return out_blocks.reshape(N, C_out, H, W)


def _reference(x, dw_w, dw_b, pw_w, pw_b):
    """Pure-JAX reference (matches torch Conv2d semantics)."""
    C_in = x.shape[1]
    dn = ("NCHW", "OIHW", "NCHW")
    y = jax.lax.conv_general_dilated(
        x, dw_w, window_strides=(1, 1), padding="SAME",
        feature_group_count=C_in, dimension_numbers=dn)
    y = y + dw_b.reshape(1, -1, 1, 1)
    z = jax.lax.conv_general_dilated(
        y, pw_w, window_strides=(1, 1), padding="VALID",
        dimension_numbers=dn)
    z = z + pw_b.reshape(1, -1, 1, 1)
    return z


if __name__ == "__main__":
    N, C_in, C_out, H, W = 2, 4, 8, 16, 16

    key = jax.random.PRNGKey(0)
    k1, k2, k3, k4, k5 = jax.random.split(key, 5)

    x = jax.random.normal(k1, (N, C_in, H, W), dtype=jnp.float32)
    dw_w = jax.random.normal(k2, (C_in, 1, 3, 3), dtype=jnp.float32) * 0.1
    dw_b = jax.random.normal(k3, (C_in,), dtype=jnp.float32) * 0.1
    pw_w = jax.random.normal(k4, (C_out, C_in, 1, 1), dtype=jnp.float32) * 0.1
    pw_b = jax.random.normal(k5, (C_out,), dtype=jnp.float32) * 0.1

    out = jax.block_until_ready(depthwise_conv_pallas(x, dw_w, dw_b, pw_w, pw_b))
    ref = jax.block_until_ready(_reference(x, dw_w, dw_b, pw_w, pw_b))

    assert out.shape == (N, C_out, H, W)
    np.testing.assert_allclose(np.asarray(out), np.asarray(ref),
                               rtol=1e-4, atol=1e-4)
    print("KERNEL_OK")
</pallas_src>

<mosaic_0001>
module attributes {stable_mosaic.version = 11 : i64} {
  func.func @kernel(%arg0: i32, %arg1: memref<1x8x256xf32, #tpu.memory_space<vmem>>, %arg2: memref<9x256xf32, #tpu.memory_space<vmem>>, %arg3: memref<8x9xf32, #tpu.memory_space<vmem>>, %arg4: memref<16x8xf32, #tpu.memory_space<vmem>>, %arg5: memref<16x1xf32, #tpu.memory_space<vmem>>, %arg6: memref<1x16x256xf32, #tpu.memory_space<vmem>>) attributes {dimension_semantics = [#tpu.dimension_semantics<parallel>], iteration_bounds = array<i64: 1>, scalar_prefetch = 0 : i64, scratch_operands = 0 : i64, tpu.core_type = #tpu.core_type<tc>, window_params = [{transform_indices = @transform_0, window_bounds = array<i64: 1, 8, 256>}, {pipeline_mode = #tpu.pipeline_mode<synchronous>, transform_indices = @transform_1, window_bounds = array<i64: 9, 256>}, {pipeline_mode = #tpu.pipeline_mode<synchronous>, transform_indices = @transform_2, window_bounds = array<i64: 8, 9>}, {pipeline_mode = #tpu.pipeline_mode<synchronous>, transform_indices = @transform_3, window_bounds = array<i64: 16, 8>}, {pipeline_mode = #tpu.pipeline_mode<synchronous>, transform_indices = @transform_4, window_bounds = array<i64: 16, 1>}, {transform_indices = @transform_5, window_bounds = array<i64: 1, 16, 256>}]} {
    %c0 = arith.constant 0 : index
    %c0_0 = arith.constant 0 : index
    %c0_1 = arith.constant 0 : index
    %0 = vector.load %arg1[%c0, %c0_0, %c0_1] : memref<1x8x256xf32, #tpu.memory_space<vmem>>, vector<1x8x256xf32>
    %1 = vector.shape_cast %0 : vector<1x8x256xf32> to vector<8x256xf32>
    %cst = arith.constant 0.000000e+00 : f32
    %2 = vector.broadcast %cst : f32 to vector<8x256xf32>
    %c17_i32 = arith.constant 17 : i32
    %3 = tpu.dynamic_rotate %1 by %c17_i32 dim 1 : vector<8x256xf32>, i32 -> vector<8x256xf32>
    %c0_2 = arith.constant 0 : index
    %c0_3 = arith.constant 0 : index
    %4 = vector.load %arg2[%c0_2, %c0_3] : memref<9x256xf32, #tpu.memory_space<vmem>>, vector<1x256xf32>
    %c0_4 = arith.constant 0 : index
    %c0_5 = arith.constant 0 : index
    %5 = vector.load %arg3[%c0_4, %c0_5] : memref<8x9xf32, #tpu.memory_space<vmem>>, vector<8x1xf32>
    %6 = vector.broadcast %4 : vector<1x256xf32> to vector<8x256xf32>
    %7 = arith.mulf %3, %6 : vector<8x256xf32>
    %8 = vector.broadcast %5 : vector<8x1xf32> to vector<8x256xf32>
    %9 = arith.mulf %7, %8 : vector<8x256xf32>
    %10 = arith.addf %2, %9 : vector<8x256xf32>
    %c16_i32 = arith.constant 16 : i32
    %11 = tpu.dynamic_rotate %1 by %c16_i32 dim 1 : vector<8x256xf32>, i32 -> vector<8x256xf32>
    %c1 = arith.constant 1 : index
    %c0_6 = arith.constant 0 : index
    %12 = vector.load %arg2[%c1, %c0_6] : memref<9x256xf32, #tpu.memory_space<vmem>>, vector<1x256xf32>
    %c0_7 = arith.constant 0 : index
    %c1_8 = arith.constant 1 : index
    %13 = vector.load %arg3[%c0_7, %c1_8] : memref<8x9xf32, #tpu.memory_space<vmem>>, vector<8x1xf32>
    %14 = vector.broadcast %12 : vector<1x256xf32> to vector<8x256xf32>
    %15 = arith.mulf %11, %14 : vector<8x256xf32>
    %16 = vector.broadcast %13 : vector<8x1xf32> to vector<8x256xf32>
    %17 = arith.mulf %15, %16 : vector<8x256xf32>
    %18 = arith.addf %10, %17 : vector<8x256xf32>
    %c15_i32 = arith.constant 15 : i32
    %19 = tpu.dynamic_rotate %1 by %c15_i32 dim 1 : vector<8x256xf32>, i32 -> vector<8x256xf32>
    %c2 = arith.constant 2 : index
    %c0_9 = arith.constant 0 : index
    %20 = vector.load %arg2[%c2, %c0_9] : memref<9x256xf32, #tpu.memory_space<vmem>>, vector<1x256xf32>
    %c0_10 = arith.constant 0 : index
    %c2_11 = arith.constant 2 : index
    %21 = vector.load %arg3[%c0_10, %c2_11] : memref<8x9xf32, #tpu.memory_space<vmem>>, vector<8x1xf32>
    %22 = vector.broadcast %20 : vector<1x256xf32> to vector<8x256xf32>
    %23 = arith.mulf %19, %22 : vector<8x256xf32>
    %24 = vector.broadcast %21 : vector<8x1xf32> to vector<8x256xf32>
    %25 = arith.mulf %23, %24 : vector<8x256xf32>
    %26 = arith.addf %18, %25 : vector<8x256xf32>
    %c1_i32 = arith.constant 1 : i32
    %27 = tpu.dynamic_rotate %1 by %c1_i32 dim 1 : vector<8x256xf32>, i32 -> vector<8x256xf32>
    %c3 = arith.constant 3 : index
    %c0_12 = arith.constant 0 : index
    %28 = vector.load %arg2[%c3, %c0_12] : memref<9x256xf32, #tpu.memory_space<vmem>>, vector<1x256xf32>
    %c0_13 = arith.constant 0 : index
    %c3_14 = arith.constant 3 : index
    %29 = vector.load %arg3[%c0_13, %c3_14] : memref<8x9xf32, #tpu.memory_space<vmem>>, vector<8x1xf32>
    %30 = vector.broadcast %28 : vector<1x256xf32> to vector<8x256xf32>
    %31 = arith.mulf %27, %30 : vector<8x256xf32>
    %32 = vector.broadcast %29 : vector<8x1xf32> to vector<8x256xf32>
    %33 = arith.mulf %31, %32 : vector<8x256xf32>
    %34 = arith.addf %26, %33 : vector<8x256xf32>
    %c4 = arith.constant 4 : index
    %c0_15 = arith.constant 0 : index
    %35 = vector.load %arg2[%c4, %c0_15] : memref<9x256xf32, #tpu.memory_space<vmem>>, vector<1x256xf32>
    %c0_16 = arith.constant 0 : index
    %c4_17 = arith.constant 4 : index
    %36 = vector.load %arg3[%c0_16, %c4_17] : memref<8x9xf32, #tpu.memory_space<vmem>>, vector<8x1xf32>
    %37 = vector.broadcast %35 : vector<1x256xf32> to vector<8x256xf32>
    %38 = arith.mulf %1, %37 : vector<8x256xf32>
    %39 = vector.broadcast %36 : vector<8x1xf32> to vector<8x256xf32>
    %40 = arith.mulf %38, %39 : vector<8x256xf32>
    %41 = arith.addf %34, %40 : vector<8x256xf32>
    %c255_i32 = arith.constant 255 : i32
    %42 = tpu.dynamic_rotate %1 by %c255_i32 dim 1 : vector<8x256xf32>, i32 -> vector<8x256xf32>
    %c5 = arith.constant 5 : index
    %c0_18 = arith.constant 0 : index
    %43 = vector.load %arg2[%c5, %c0_18] : memref<9x256xf32, #tpu.memory_space<vmem>>, vector<1x256xf32>
    %c0_19 = arith.constant 0 : index
    %c5_20 = arith.constant 5 : index
    %44 = vector.load %arg3[%c0_19, %c5_20] : memref<8x9xf32, #tpu.memory_space<vmem>>, vector<8x1xf32>
    %45 = vector.broadcast %43 : vector<1x256xf32> to vector<8x256xf32>
    %46 = arith.mulf %42, %45 : vector<8x256xf32>
    %47 = vector.broadcast %44 : vector<8x1xf32> to vector<8x256xf32>
    %48 = arith.mulf %46, %47 : vector<8x256xf32>
    %49 = arith.addf %41, %48 : vector<8x256xf32>
    %c241_i32 = arith.constant 241 : i32
    %50 = tpu.dynamic_rotate %1 by %c241_i32 dim 1 : vector<8x256xf32>, i32 -> vector<8x256xf32>
    %c6 = arith.constant 6 : index
    %c0_21 = arith.constant 0 : index
    %51 = vector.load %arg2[%c6, %c0_21] : memref<9x256xf32, #tpu.memory_space<vmem>>, vector<1x256xf32>
    %c0_22 = arith.constant 0 : index
    %c6_23 = arith.constant 6 : index
    %52 = vector.load %arg3[%c0_22, %c6_23] : memref<8x9xf32, #tpu.memory_space<vmem>>, vector<8x1xf32>
    %53 = vector.broadcast %51 : vector<1x256xf32> to vector<8x256xf32>
    %54 = arith.mulf %50, %53 : vector<8x256xf32>
    %55 = vector.broadcast %52 : vector<8x1xf32> to vector<8x256xf32>
    %56 = arith.mulf %54, %55 : vector<8x256xf32>
    %57 = arith.addf %49, %56 : vector<8x256xf32>
    %c240_i32 = arith.constant 240 : i32
    %58 = tpu.dynamic_rotate %1 by %c240_i32 dim 1 : vector<8x256xf32>, i32 -> vector<8x256xf32>
    %c7 = arith.constant 7 : index
    %c0_24 = arith.constant 0 : index
    %59 = vector.load %arg2[%c7, %c0_24] : memref<9x256xf32, #tpu.memory_space<vmem>>, vector<1x256xf32>
    %c0_25 = arith.constant 0 : index
    %c7_26 = arith.constant 7 : index
    %60 = vector.load %arg3[%c0_25, %c7_26] : memref<8x9xf32, #tpu.memory_space<vmem>>, vector<8x1xf32>
    %61 = vector.broadcast %59 : vector<1x256xf32> to vector<8x256xf32>
    %62 = arith.mulf %58, %61 : vector<8x256xf32>
    %63 = vector.broadcast %60 : vector<8x1xf32> to vector<8x256xf32>
    %64 = arith.mulf %62, %63 : vector<8x256xf32>
    %65 = arith.addf %57, %64 : vector<8x256xf32>
    %c239_i32 = arith.constant 239 : i32
    %66 = tpu.dynamic_rotate %1 by %c239_i32 dim 1 : vector<8x256xf32>, i32 -> vector<8x256xf32>
    %c8 = arith.constant 8 : index
    %c0_27 = arith.constant 0 : index
    %67 = vector.load %arg2[%c8, %c0_27] : memref<9x256xf32, #tpu.memory_space<vmem>>, vector<1x256xf32>
    %c0_28 = arith.constant 0 : index
    %c8_29 = arith.constant 8 : index
    %68 = vector.load %arg3[%c0_28, %c8_29] : memref<8x9xf32, #tpu.memory_space<vmem>>, vector<8x1xf32>
    %69 = vector.broadcast %67 : vector<1x256xf32> to vector<8x256xf32>
    %70 = arith.mulf %66, %69 : vector<8x256xf32>
    %71 = vector.broadcast %68 : vector<8x1xf32> to vector<8x256xf32>
    %72 = arith.mulf %70, %71 : vector<8x256xf32>
    %73 = arith.addf %65, %72 : vector<8x256xf32>
    %c0_30 = arith.constant 0 : index
    %c0_31 = arith.constant 0 : index
    %74 = vector.load %arg4[%c0_30, %c0_31] : memref<16x8xf32, #tpu.memory_space<vmem>>, vector<16x8xf32>
    %cst_32 = arith.constant dense<0.000000e+00> : vector<16x256xf32>
    %75 = tpu.matmul %74, %73, %cst_32 {dimension_numbers = #tpu.dot_dimension_numbers<[1], [0], [0], [1], [0, 0, 1, 1], [], []>} : vector<16x8xf32>, vector<8x256xf32>, vector<16x256xf32> -> vector<16x256xf32>
    %c0_33 = arith.constant 0 : index
    %c0_34 = arith.constant 0 : index
    %76 = vector.load %arg5[%c0_33, %c0_34] : memref<16x1xf32, #tpu.memory_space<vmem>>, vector<16x1xf32>
    %77 = vector.broadcast %76 : vector<16x1xf32> to vector<16x256xf32>
    %78 = arith.addf %75, %77 : vector<16x256xf32>
    %c0_35 = arith.constant 0 : index
    %c0_36 = arith.constant 0 : index
    %c0_37 = arith.constant 0 : index
    %79 = vector.load %arg6[%c0_35, %c0_36, %c0_37] : memref<1x16x256xf32, #tpu.memory_space<vmem>>, vector<1x16x256xf32>
    %80 = vector.shape_cast %79 : vector<1x16x256xf32> to vector<16x256xf32>
    %81 = vector.shape_cast %78 : vector<16x256xf32> to vector<1x16x256xf32>
    tpu.vector_store %arg6[%c0_35, %c0_36, %c0_37], %81 {strides = array<i32>} : memref<1x16x256xf32, #tpu.memory_space<vmem>>, vector<1x16x256xf32>,
    return
  }
  func.func @transform_0(%arg0: i32) -> (i32, i32, i32) {
    %c0_i32 = arith.constant 0 : i32
    %c0_i32_0 = arith.constant 0 : i32
    %c0_i32_1 = arith.constant 0 : i32
    return %arg0, %c0_i32, %c0_i32_0 : i32, i32, i32
  }
  func.func @transform_1(%arg0: i32) -> (i32, i32) {
    %c0_i32 = arith.constant 0 : i32
    %c0_i32_0 = arith.constant 0 : i32
    %c0_i32_1 = arith.constant 0 : i32
    return %c0_i32, %c0_i32_0 : i32, i32
  }
  func.func @transform_2(%arg0: i32) -> (i32, i32) {
    %c0_i32 = arith.constant 0 : i32
    %c0_i32_0 = arith.constant 0 : i32
    %c0_i32_1 = arith.constant 0 : i32
    return %c0_i32, %c0_i32_0 : i32, i32
  }
  func.func @transform_3(%arg0: i32) -> (i32, i32) {
    %c0_i32 = arith.constant 0 : i32
    %c0_i32_0 = arith.constant 0 : i32
    %c0_i32_1 = arith.constant 0 : i32
    return %c0_i32, %c0_i32_0 : i32, i32
  }
  func.func @transform_4(%arg0: i32) -> (i32, i32) {
    %c0_i32 = arith.constant 0 : i32
    %c0_i32_0 = arith.constant 0 : i32
    %c0_i32_1 = arith.constant 0 : i32
    return %c0_i32, %c0_i32_0 : i32, i32
  }
  func.func @transform_5(%arg0: i32) -> (i32, i32, i32) {
    %c0_i32 = arith.constant 0 : i32
    %c0_i32_0 = arith.constant 0 : i32
    %c0_i32_1 = arith.constant 0 : i32
    return %arg0, %c0_i32, %c0_i32_0 : i32, i32, i32
  }
}

</mosaic_0001>

<bundles_post_ra>
// kernel: tile.16
= control target key start
LH: loop header
LB: loop body
LE: loop exit
PB: predicated region body
PF: predicated region fallthrough
CT: control target
= control target key end

     0   :  { %s22_s0 = inlined_call_operand.vmem [shape: f32[8], index: 0, kind: input, shape index: {}]   ;;  %s23_s1 = inlined_call_operand.vmem [shape: f32[2,8], index: 1, kind: output, shape index: {}]  }
   0x1   :  { %v4_v0 = vld [vmem:[%s22_s0] ss:$0 sm:$0xff] }
   0x2   :  { %5 = vst [vmem:[%s23_s1] sm:$0x3] %v4_v0 }

// kernel: tile.0
= control target key start
LH: loop header
LB: loop body
LE: loop exit
PB: predicated region body
PF: predicated region fallthrough
CT: control target
= control target key end

     0   :  { %s67_s8 = smov 125   ;;  %vm8_vm0 = vcmask 7168   ;;  %s68_s11 = smov 126   ;;  %s118_s0 = inlined_call_operand.vmem [shape: f32[2,8], index: 0, kind: input, shape index: {}]   ;;  %s119_s1 = inlined_call_operand.vmem [shape: f32[16,1], index: 1, kind: output, shape index: {}]  }
   0x1   :  { %v5_v0 = vld [vmem:[%s118_s0] sm:$0x3]  ;;  %s66_s0 = smov 127   ;;  %s69_s12 = smov 124  }
   0x2   :  { %6 = vst [vmem:[#allocation0] sm:$0x3] %v5_v0  ;;  %s70_s13 = smov 123   ;;  %s71_s14 = smov 122  }
   0x3   :  { %s72_s15 = smov 121  }
   0x9   :  { %v10_v1 = vld [vmem:[#allocation0] sm:$0x3]  }
   0xa   :  { %v22_v2 = vld [vmem:[#allocation0] sm:$0x3]   ;;  %11 = vrot.lane.b32.xlu0 %v10_v1, %s66_s0 }
   0xb   :  { %23 = vrot.lane.b32.xlu1 %v22_v2, %s67_s8  ;;  %v16_v3 = vld [vmem:[#allocation0] sm:$0x3]  }
   0xc   :  { %v28_v4 = vld [vmem:[#allocation0] sm:$0x3]  }
   0xd   :  { %v7_v5 = vld [vmem:[#allocation0] sm:$0x3]  }
   0xe   :  { %9 = vst.msk [vmem:[%s119_s1] ss:$8 sm:$0x3] %vm8_vm0, %v7_v5   ;;  %17 = vrot.lane.b32.xlu0 %v16_v3, %s68_s11  ;;  %v34_v6 = vld [vmem:[#allocation0] sm:$0x3]  }
   0xf   :  { %29 = vrot.lane.b32.xlu1 %v28_v4, %s69_s12  ;;  %v40_v7 = vld [vmem:[#allocation0] sm:$0x3]  }
  0x10   :  { %v46_v8 = vld [vmem:[#allocation0] sm:$0x3]  }
  0x12   :  { %35 = vrot.lane.b32.xlu0 %v34_v6, %s70_s13 }
  0x13   :  { %41 = vrot.lane.b32.xlu1 %v40_v7, %s71_s14 }
  0x16   :  { %47 = vrot.lane.b32.xlu0 %v46_v8, %s72_s15 }
  0x7c   :  { %v12_v9 = vpop.permute.xlu0 %11  }
  0x7d   :  { %v24_v10 = vpop.permute.xlu1 %23   ;;  %52 = vst.msk [vmem:[%s119_s1 + $0x1] ss:$8 sm:$0x3] %vm8_vm0, %v12_v9  }
  0x7e   :  { %54 = vst.msk [vmem:[%s119_s1 + $0x3] ss:$8 sm:$0x3] %vm8_vm0, %v24_v10  }
  0x80   :  { %v18_v11 = vpop.permute.xlu0 %17  }
  0x81   :  { %v30_v12 = vpop.permute.xlu1 %29   ;;  %53 = vst.msk [vmem:[%s119_s1 + $0x2] ss:$8 sm:$0x3] %vm8_vm0, %v18_v11  }
  0x82   :  { %55 = vst.msk [vmem:[%s119_s1 + $0x4] ss:$8 sm:$0x3] %vm8_vm0, %v30_v12  }
  0x84   :  { %v36_v13 = vpop.permute.xlu0 %35  }
  0x85   :  { %v42_v14 = vpop.permute.xlu1 %41   ;;  %56 = vst.msk [vmem:[%s119_s1 + $0x5] ss:$8 sm:$0x3] %vm8_vm0, %v36_v13  }
  0x86   :  { %57 = vst.msk [vmem:[%s119_s1 + $0x6] ss:$8 sm:$0x3] %vm8_vm0, %v42_v14  }
  0x88   :  { %v48_v15 = vpop.permute.xlu0 %47  }
  0x89   :  { %58 = vst.msk [vmem:[%s119_s1 + $0x7] ss:$8 sm:$0x3] %vm8_vm0, %v48_v15  }

// kernel: depthwise_conv_pallas.1
= control target key start
LH: loop header
LB: loop body
LE: loop exit
PB: predicated region body
PF: predicated region fallthrough
CT: control target
= control target key end

     0   :  { %v435_v0 = vmov 0   ;;  %v436_v3 = vmov 2   ;;  %s437_s22 = smov 17   ;;  %v438_v5 = vmov 1   ;;  %v440_v6 = vmov 3   ;;  %s441_s25 = smov 15   ;;  %s637_s2 = inlined_call_operand.vmem [shape: f32[8,9], index: 2, kind: input, shape index: {}]   ;;  %s638_s0 = inlined_call_operand.vmem [shape: f32[1,8,256], index: 0, kind: input, shape index: {}]   ;;  %s639_s4 = inlined_call_operand.vmem [shape: f32[16,1], index: 4, kind: input, shape index: {}]   ;;  %s640_s1 = inlined_call_operand.vmem [shape: f32[9,256], index: 1, kind: input, shape index: {}]   ;;  %s641_s3 = inlined_call_operand.vmem [shape: f32[16,8], index: 3, kind: input, shape index: {}]   ;;  %s642_s5 = inlined_call_operand.vmem [shape: f32[1,16,256], index: 5, kind: output, shape index: {}]  }
   0x1   :  { %424 = vset.pattern.permute.xlu0 %v435_v0  ;;  %v32_v1 = vld [vmem:[%s637_s2] sm:$0xff]  ;;  %426 = vset.pattern.permute.xlu1 %v436_v3  ;;  %v495_v4 = vld [vmem:[%s638_s0 + $0x8] sm:$0xff]  ;;  %s439_s2 = smov 16   ;;  %v442_v7 = vmov 5   ;;  %v444_v8 = vmov 4   ;;  %s445_s26 = smov 127   ;;  %v26_v24 = vlaneseq }
   0x2   :  { %v489_v2 = vld [vmem:[%s638_s0] sm:$0xff]  ;;  %48 = vperm.xlu0 %424, %v32_v1   ;;  %s443_s0 = smov 1   ;;  %v446_v9 = vmov 7   ;;  %s447_s27 = smov 113   ;;  %v448_v10 = vmov 6   ;;  %v449_v11 = vmov 8  }
   0x3   :  { %22 = vrot.lane.b32.xlu1 %v489_v2, %s437_s22  ;;  %s450_s28 = smov 112   ;;  %s451_s29 = smov 111   ;;  %v452_v12 = vmov 0.0   ;;  %v290_v13 = vld [vmem:[%s639_s4] sm:$0xff]  ;;  %v291_v14 = vld [vmem:[%s639_s4 + $0x8] sm:$0xff]  ;;  %v35_v27 = vshrl.u32 %v26_v24, 7 }
   0x4   :  { %373 = vmatprep.mubr.f32.mxu0 %v452_v12  ;;  %379 = vmatprep.mubr.f32.mxu1 %v452_v12  ;;  %v522_v28 = vand.u32 127, %v26_v24  ;;  %v31_v31 = vld [vmem:[%s640_s1] ss:$8 sm:$0x3]  ;;  %vm302_vm8 = vcmask 64512  }
   0x5   :  { %v531_v32 = vsub.s32 0, %v35_v27  ;;  %v533_v33 = vsub.s32 1, %v35_v27  ;;  %v394_v34 = vld [vmem:[%s640_s1 + $0x1] ss:$8 sm:$0x3] }
   0x6   :  { %425 = vset.pattern.permute.xlu0 %v438_v5  ;;  %vm28_vm0 = vcmp.lt.s32.totalorder %v522_v28, 17  ;;  %vm59_vm1 = vcmp.lt.s32.totalorder %v522_v28, 16  ;;  %v395_v35 = vld [vmem:[%s640_s1 + $0x2] ss:$8 sm:$0x3]  ;;  %vm89_vm2 = vcmp.lt.s32.totalorder %v522_v28, 15 }
   0x7   :  { %24 = vrot.lane.b32.xlu1 %v495_v4, %s437_s22  ;;  %78 = vperm.xlu0 %425, %v32_v1   ;;  %v396_v37 = vld [vmem:[%s640_s1 + $0x3] ss:$8 sm:$0x3]  ;;  %v397_v38 = vld [vmem:[%s640_s1 + $0x4] ss:$8 sm:$0x3]  ;;  %v37_v39 = vrot.slane %v31_v31, %v531_v32  ;;  %v68_v40 = vrot.slane %v394_v34, %v531_v32  ;;  %v72_v41 = vrot.slane %v394_v34, %v533_v33 }
   0x8   :  { %v41_v43 = vrot.slane %v31_v31, %v533_v33  ;;  %v98_v46 = vrot.slane %v395_v35, %v531_v32  ;;  %v102_v47 = vrot.slane %v395_v35, %v533_v33  ;;  %vm119_vm3 = vcmp.lt.s32.totalorder %v522_v28, 1  ;;  %v399_v3 = vld [vmem:[%s640_s1 + $0x6] ss:$8 sm:$0x3] }
   0x9   :  { %v128_v48 = vrot.slane %v396_v37, %v531_v32  ;;  %v155_v49 = vrot.slane %v397_v38, %v533_v33  ;;  %v132_v53 = vrot.slane %v396_v37, %v533_v33  ;;  %v151_v54 = vrot.slane %v397_v38, %v531_v32 }
   0xa   :  { %vm172_vm4 = vcmp.lt.s32.totalorder %v522_v28, 127  ;;  %vm202_vm5 = vcmp.lt.s32.totalorder %v522_v28, 113  ;;  %vm232_vm6 = vcmp.lt.s32.totalorder %v522_v28, 112  ;;  %vm262_vm7 = vcmp.lt.s32.totalorder %v522_v28, 111 }
   0xb   :  { %55 = vrot.lane.b32.xlu1 %v489_v2, %s439_s2  ;;  %57 = vrot.lane.b32.xlu0 %v495_v4, %s439_s2  ;;  %v159_v63 = vmul.f32 %v155_v49, %v495_v4 }
   0xc   :  { %427 = vset.pattern.permute.xlu0 %v440_v6 }
   0xf   :  { %108 = vperm.xlu1 %426, %v32_v1   ;;  %85 = vrot.lane.b32.xlu0 %v489_v2, %s441_s25 }
  0x13   :  { %87 = vrot.lane.b32.xlu1 %v495_v4, %s441_s25  ;;  %138 = vperm.xlu0 %427, %v32_v1  }
  0x14   :  { %429 = vset.pattern.permute.xlu1 %v442_v7 }
  0x17   :  { %115 = vrot.lane.b32.xlu1 %v489_v2, %s443_s0  ;;  %428 = vset.pattern.permute.xlu0 %v444_v8  ;;  %v158_v8 = vmul.f32 %v151_v54, %v489_v2 }
  0x18   :  { %161 = vperm.xlu0 %428, %v32_v1  }
  0x1b   :  { %117 = vrot.lane.b32.xlu1 %v495_v4, %s443_s0 }
  0x1c   :  { %170 = vrot.lane.b32.xlu0 %v495_v4, %s445_s26 }
  0x1d   :  { %431 = vset.pattern.permute.xlu0 %v446_v9 }
  0x1f   :  { %191 = vperm.xlu1 %429, %v32_v1  }
  0x20   :  { %198 = vrot.lane.b32.xlu0 %v489_v2, %s447_s27 }
  0x23   :  { %168 = vrot.lane.b32.xlu1 %v489_v2, %s445_s26 }
  0x24   :  { %430 = vset.pattern.permute.xlu1 %v448_v10  ;;  %251 = vperm.xlu0 %431, %v32_v1  }
  0x27   :  { %221 = vperm.xlu1 %430, %v32_v1  }
  0x28   :  { %432 = vset.pattern.permute.xlu0 %v449_v11 }
  0x29   :  { %281 = vperm.xlu0 %432, %v32_v1   ;;  %v398_v1 = vld [vmem:[%s640_s1 + $0x5] ss:$8 sm:$0x3] }
  0x2a   :  { %v181_v12 = vrot.slane %v398_v1, %v531_v32 }
  0x2b   :  { %200 = vrot.lane.b32.xlu1 %v495_v4, %s447_s27 }
  0x2c   :  { %434 = vset.pattern.permute.xlu1 %v435_v0 }
  0x2d   :  { %433 = vset.pattern.permute.xlu0 %v435_v0 }
  0x2e   :  { %294 = vperm.xlu0 %433, %v290_v13   ;;  %v185_v13 = vrot.slane %v398_v1, %v533_v33 }
  0x2f   :  { %228 = vrot.lane.b32.xlu1 %v489_v2, %s450_s28 }
  0x33   :  { %230 = vrot.lane.b32.xlu1 %v495_v4, %s450_s28 }
  0x37   :  { %258 = vrot.lane.b32.xlu1 %v489_v2, %s451_s29 }
  0x3b   :  { %260 = vrot.lane.b32.xlu1 %v495_v4, %s451_s29 }
  0x3f   :  { %299 = vperm.xlu1 %434, %v291_v14   ;;  %v211_v14 = vrot.slane %v399_v3, %v531_v32 }
  0x75   :  { %v23_v15 = vpop.permute.xlu1 %22 }
  0x79   :  { %v25_v16 = vpop.permute.xlu1 %24 }
  0x7a   :  { %v29_v55 = vsel %vm28_vm0, %v23_v15, %v25_v16  ;;  %v30_v56 = vsel %vm28_vm0, %v25_v16, %v23_v15 }
  0x7b   :  { %v44_v6 = vmul.f32 %v37_v39, %v30_v56  ;;  %v45_v7 = vmul.f32 %v41_v43, %v29_v55 }
  0x7d   :  { %v56_v17 = vpop.permute.xlu1 %55  ;;  %v518_v18 = vpop.permute.xlu0 %48 }
  0x7e   :  { %v51_v15 = vmul.f32 %v518_v18, %v44_v6  ;;  %v52_v16 = vmul.f32 %v518_v18, %v45_v7 }
  0x82   :  { %v79_v20 = vpop.permute.xlu0 %78 }
  0x86   :  { %v58_v22 = vpop.permute.xlu0 %57 }
  0x87   :  { %v60_v44 = vsel %vm59_vm1, %v56_v17, %v58_v22  ;;  %v61_v45 = vsel %vm59_vm1, %v58_v22, %v56_v17  ;;  %v400_v22 = vld [vmem:[%s640_s1 + $0x7] ss:$8 sm:$0x3] }
  0x88   :  { %v75_v57 = vmul.f32 %v68_v40, %v61_v45  ;;  %v76_v58 = vmul.f32 %v72_v41, %v60_v44  ;;  %v241_v35 = vrot.slane %v400_v22, %v531_v32 }
  0x8a   :  { %v520_v19 = vpop.permute.xlu1 %108  ;;  %v86_v25 = vpop.permute.xlu0 %85  ;;  %v81_v9 = vmul.f32 %v79_v20, %v75_v57  ;;  %v82_v10 = vmul.f32 %v79_v20, %v76_v58 }
  0x8c   :  { %v83_v18 = vadd.f32 %v81_v9, %v51_v15 }
  0x8e   :  { %v88_v21 = vpop.permute.xlu1 %87  ;;  %v524_v29 = vpop.permute.xlu0 %138 }
  0x8f   :  { %v90_v51 = vsel %vm89_vm2, %v86_v25, %v88_v21  ;;  %v91_v52 = vsel %vm89_vm2, %v88_v21, %v86_v25  ;;  %v215_v25 = vrot.slane %v399_v3, %v533_v33 }
  0x90   :  { %v105_v61 = vmul.f32 %v98_v46, %v91_v52  ;;  %v106_v62 = vmul.f32 %v102_v47, %v90_v51  ;;  %v401_v51 = vld [vmem:[%s640_s1 + $0x10] ss:$8 sm:$0x3] }
  0x91   :  { %v271_v57 = vrot.slane %v401_v51, %v531_v32  ;;  %v275_v58 = vrot.slane %v401_v51, %v533_v33 }
  0x92   :  { %v116_v23 = vpop.permute.xlu1 %115  ;;  %v111_v2 = vmul.f32 %v520_v19, %v105_v61  ;;  %v112_v17 = vmul.f32 %v520_v19, %v106_v62 }
  0x93   :  { %v553_v42 = vpop.permute.xlu0 %161 }
  0x94   :  { %v113_v37 = vadd.f32 %v111_v2, %v83_v18  ;;  %v164_v43 = vmul.f32 %v553_v42, %v158_v8  ;;  %v165_v44 = vmul.f32 %v553_v42, %v159_v63 }
  0x96   :  { %v118_v26 = vpop.permute.xlu1 %117 }
  0x97   :  { %v120_v59 = vsel %vm119_vm3, %v116_v23, %v118_v26  ;;  %v121_v60 = vsel %vm119_vm3, %v118_v26, %v116_v23  ;;  %v171_v0 = vpop.permute.xlu0 %170  ;;  %v84_v26 = vadd.f32 %v82_v10, %v52_v16 }
  0x98   :  { %v135_v11 = vmul.f32 %v128_v48, %v121_v60  ;;  %v136_v4 = vmul.f32 %v132_v53, %v120_v59 }
  0x99   :  { %v114_v38 = vadd.f32 %v112_v17, %v84_v26 }
  0x9a   :  { %v526_v30 = vpop.permute.xlu1 %191  ;;  %v141_v19 = vmul.f32 %v524_v29, %v135_v11  ;;  %v142_v27 = vmul.f32 %v524_v29, %v136_v4 }
  0x9b   :  { %v199_v21 = vpop.permute.xlu0 %198 }
  0x9c   :  { %v143_v46 = vadd.f32 %v141_v19, %v113_v37  ;;  %v144_v47 = vadd.f32 %v142_v27, %v114_v38 }
  0x9e   :  { %v169_v36 = vpop.permute.xlu1 %168  ;;  %v166_v59 = vadd.f32 %v164_v43, %v143_v46  ;;  %v167_v60 = vadd.f32 %v165_v44, %v144_v47 }
  0x9f   :  { %v173_v23 = vsel %vm172_vm4, %v169_v36, %v171_v0  ;;  %v174_v24 = vsel %vm172_vm4, %v171_v0, %v169_v36  ;;  %v245_v36 = vrot.slane %v400_v22, %v533_v33  ;;  %v252_v56 = vpop.permute.xlu0 %251 }
  0xa0   :  { %v188_v39 = vmul.f32 %v181_v12, %v173_v23  ;;  %v189_v40 = vmul.f32 %v185_v13, %v174_v24 }
  0xa2   :  { %v561_v50 = vpop.permute.xlu1 %221  ;;  %v194_v52 = vmul.f32 %v526_v30, %v188_v39  ;;  %v195_v53 = vmul.f32 %v526_v30, %v189_v40 }
  0xa4   :  { %v196_v63 = vadd.f32 %v194_v52, %v166_v59  ;;  %v197_v0 = vadd.f32 %v195_v53, %v167_v60  ;;  %v282_v7 = vpop.permute.xlu0 %281 }
  0xa6   :  { %v201_v5 = vpop.permute.xlu1 %200 }
  0xa7   :  { %v203_v31 = vsel %vm202_vm5, %v199_v21, %v201_v5  ;;  %v204_v34 = vsel %vm202_vm5, %v201_v5, %v199_v21 }
  0xa8   :  { %v218_v48 = vmul.f32 %v211_v14, %v203_v31  ;;  %v219_v49 = vmul.f32 %v215_v25, %v204_v34  ;;  %v289_v14 = vld [vmem:[%s641_s3 + $0x8] sm:$0xff] }
  0xa9   :  { %v295_v15 = vpop.permute.xlu0 %294 }
  0xaa   :  { %v229_v20 = vpop.permute.xlu1 %228  ;;  %v224_v61 = vmul.f32 %v561_v50, %v218_v48  ;;  %v225_v62 = vmul.f32 %v561_v50, %v219_v49  ;;  %v288_v50 = vld [vmem:[%s641_s3] sm:$0xff] }
  0xac   :  { %v227_v9 = vadd.f32 %v225_v62, %v197_v0  ;;  %v226_v32 = vadd.f32 %v224_v61, %v196_v63 }
  0xae   :  { %v231_v41 = vpop.permute.xlu1 %230 }
  0xaf   :  { %v233_v29 = vsel %vm232_vm6, %v229_v20, %v231_v41  ;;  %v234_v45 = vsel %vm232_vm6, %v231_v41, %v229_v20 }
  0xb0   :  { %v248_v54 = vmul.f32 %v241_v35, %v233_v29  ;;  %v249_v42 = vmul.f32 %v245_v36, %v234_v45 }
  0xb2   :  { %v259_v55 = vpop.permute.xlu1 %258  ;;  %v254_v1 = vmul.f32 %v252_v56, %v248_v54  ;;  %v255_v30 = vmul.f32 %v252_v56, %v249_v42 }
  0xb4   :  { %v257_v11 = vadd.f32 %v255_v30, %v227_v9  ;;  %v256_v4 = vadd.f32 %v254_v1, %v226_v32 }
  0xb6   :  { %v261_v3 = vpop.permute.xlu1 %260 }
  0xb7   :  { %v263_v5 = vsel %vm262_vm7, %v259_v55, %v261_v3  ;;  %v264_v6 = vsel %vm262_vm7, %v261_v3, %v259_v55 }
  0xb8   :  { %v278_v8 = vmul.f32 %v271_v57, %v263_v5  ;;  %v279_v28 = vmul.f32 %v275_v58, %v264_v6 }
  0xba   :  { %v284_v10 = vmul.f32 %v282_v7, %v278_v8  ;;  %v285_v33 = vmul.f32 %v282_v7, %v279_v28  ;;  %v300_v16 = vpop.permute.xlu1 %299 }
  0xbc   :  { %v287_v12 = vadd.f32 %v285_v33, %v257_v11  ;;  %v286_v13 = vadd.f32 %v284_v10, %v256_v4 }
  0xbe   :  { %339 = vmatprep.subr.mxu0 %v287_v12  ;;  %404 = vmatprep.subr.mxu1 %v287_v12 }
  0xbf   :  { %340 = vmatpush1.msra.mxu0 %v286_v13  ;;  %405 = vmatpush1.msra.mxu1 %v286_v13 }
  0xc0   :  { %402 = vmatmul.mubr.msk.f32.vlgmr.msra.gmra.mxu0 %vm302_vm8, %v288_v50  ;;  %403 = vmatmul.mubr.msk.f32.vlgmr.msra.gmra.mxu1 %vm302_vm8, %v289_v14 }
 0x180   :  { %v375_v2 = vpop.f32.mrf.mxu0  ;;  %v381_v17 = vpop.f32.mrf.mxu1 }
 0x181   :  { %v376_v21 = vadd.f32 %v375_v2, %v295_v15  ;;  %v382_v20 = vadd.f32 %v381_v17, %v300_v16 }
 0x182   :  { %v377_v22 = vpop.f32.mrf.mxu0  ;;  %v383_v23 = vpop.f32.mrf.mxu1 }
 0x183   :  { %386 = vst [vmem:[%s642_s5] sm:$0xff] %v376_v21  ;;  %388 = vst [vmem:[%s642_s5 + $0x10] sm:$0xff] %v382_v20  ;;  %v378_v24 = vadd.f32 %v377_v22, %v295_v15  ;;  %v384_v25 = vadd.f32 %v383_v23, %v300_v16 }
 0x185   :  { %387 = vst [vmem:[%s642_s5 + $0x8] sm:$0xff] %v378_v24  ;;  %389 = vst [vmem:[%s642_s5 + $0x18] sm:$0xff] %v384_v25 }

</bundles_post_ra>
